<compile_context>
chip_gen: v7x
topology: tpu7x:2x2x1
jax: 0.10.0
libtpu: 0.0.40
codegen_flags: <defaults>
</compile_context>

<pallas_src>
import jax
import jax.numpy as jnp
from jax.experimental import pallas as pl
from jax.experimental.pallas import tpu as pltpu


def _round_up(v, m):
    return (v + m - 1) // m * m


def _proj_kernel(x_ref, w_ref, b_ref, o_ref):
    # (tm, K) @ (K, N_pad) on the MXU, accumulate in f32, add broadcast bias row.
    acc = jnp.dot(x_ref[...], w_ref[...], preferred_element_type=jnp.float32)
    o_ref[...] = (acc + b_ref[...]).astype(o_ref.dtype)


def img_embed_forward(x, weight, bias, num_patches_w, num_patches_h, patch_size,
                      tm_max=512):
    """x: (B, S, E); weight: (E, C, P, P) [ConvTranspose2d layout]; bias: (C,).
    Returns (B, C, num_patches_h*P, num_patches_w*P) — same as PyTorch.

    tm_max: upper bound on the M-tile. 512 keeps 2x(x tile)+2x(out tile)+weight
    well under the scoped-VMEM default on v5e (16 MiB), v6e (32 MiB) and v7x
    (32 MiB scoped / 64 MiB physical) for typical E<=1536, C*P*P<=1024 in f32,
    while still amortizing per-grid-step overhead.
    """
    B, S, E = x.shape
    Ein, C, P, P2 = weight.shape
    assert Ein == E and P == patch_size and P2 == patch_size
    assert S == num_patches_w * num_patches_h

    x2d = x.reshape(B * S, E)                                   # (M, K)
    w2d = weight.reshape(E, C * P * P)                          # (K, N)
    b2d = jnp.broadcast_to(bias[:, None, None], (C, P, P)).reshape(1, C * P * P)

    M, K = x2d.shape
    N = C * P * P

    # Pad N (lane dim) to a multiple of 128: lane-dense output avoids masked
    # partial stores and wasted MXU lanes. Padding columns are zero in w/bias.
    N_pad = _round_up(N, 128)
    if N_pad != N:
        w2d = jnp.pad(w2d, ((0, 0), (0, N_pad - N)))
        b2d = jnp.pad(b2d, ((0, 0), (0, N_pad - N)))

    # Tile over M so BlockSpec double-buffering overlaps HBM->VMEM DMA of the
    # next x tile with the current MXU pass. Weight/bias use a constant
    # index_map, so they are DMA'd once and stay resident across the grid.
    tm = min(tm_max, _round_up(M, 8))
    M_pad = _round_up(M, tm)
    if M_pad != M:
        x2d = jnp.pad(x2d, ((0, M_pad - M), (0, 0)))
    grid_m = M_pad // tm

    y = pl.pallas_call(
        _proj_kernel,
        out_shape=jax.ShapeDtypeStruct((M_pad, N_pad), x.dtype),
        grid_spec=pl.GridSpec(
            grid=(grid_m,),
            in_specs=[
                pl.BlockSpec((tm, K), lambda i: (i, 0)),        # x tile, streams over M
                pl.BlockSpec((K, N_pad), lambda i: (0, 0)),     # weight, resident
                pl.BlockSpec((1, N_pad), lambda i: (0, 0)),     # bias row, resident
            ],
            out_specs=pl.BlockSpec((tm, N_pad), lambda i: (i, 0)),
        ),
        compiler_params=pltpu.CompilerParams(
            # M tiles are independent -> shard across TensorCores (2 TCs on v7x).
            dimension_semantics=("parallel",),
        ),
    )(x2d, w2d, b2d)

    # Drop M / N padding, then rearrange to NCHW.
    y = y[:M, :N]
    # TODO(synk): the patch->NCHW scatter below stays as a plain-JAX
    # reshape/transpose (XLA copy); it is not expressible as a rectangular
    # Pallas out_spec because the permutation scatters elements within a row.
    y = y.reshape(B, num_patches_h, num_patches_w, C, P, P)
    y = jnp.transpose(y, (0, 3, 1, 4, 2, 5))
    y = y.reshape(B, C, num_patches_h * P, num_patches_w * P)
    return y


def _reference(x, weight, bias, num_patches_w, num_patches_h, patch_size):
    # Pure-JAX reference: same matmul formulation (ConvTranspose2d, k==stride).
    B, S, E = x.shape
    C = weight.shape[1]
    P = patch_size
    y = jnp.einsum("bse,ecij->bscij", x, weight) + bias[None, None, :, None, None]
    y = y.reshape(B, num_patches_h, num_patches_w, C, P, P)
    y = jnp.transpose(y, (0, 3, 1, 4, 2, 5))
    return y.reshape(B, C, num_patches_h * P, num_patches_w * P)


def _run_case(key, B, embed_dim, in_chans, patch_size, num_patches_h,
              num_patches_w, tm_max):
    S = num_patches_h * num_patches_w
    kx, kw, kb = jax.random.split(key, 3)
    x = jax.random.normal(kx, (B, S, embed_dim), dtype=jnp.float32)
    # ConvTranspose2d weight: (in_channels=embed_dim, out_channels=in_chans, P, P)
    weight = jax.random.normal(
        kw, (embed_dim, in_chans, patch_size, patch_size), dtype=jnp.float32) * 0.02
    bias = jax.random.normal(kb, (in_chans,), dtype=jnp.float32) * 0.02

    out = img_embed_forward(x, weight, bias, num_patches_w, num_patches_h,
                            patch_size, tm_max=tm_max)
    out = jax.block_until_ready(out)

    ref = _reference(x, weight, bias, num_patches_w, num_patches_h, patch_size)
    assert out.shape == (B, in_chans, num_patches_h * patch_size,
                         num_patches_w * patch_size)
    assert jnp.allclose(out, ref, atol=1e-4, rtol=1e-4)


if __name__ == "__main__":
    key = jax.random.PRNGKey(0)
    k1, k2 = jax.random.split(key)

    # Small case (tiny M/N, exercises N padding to 128 and M rounding to 8).
    _run_case(k1, B=2, embed_dim=32, in_chans=3, patch_size=4,
              num_patches_h=4, num_patches_w=4, tm_max=512)

    # Slightly larger case exercising multiple M tiles (grid > 1) and N padding.
    _run_case(k2, B=2, embed_dim=128, in_chans=3, patch_size=8,
              num_patches_h=8, num_patches_w=8, tm_max=64)

    print("KERNEL_OK")
</pallas_src>

<mosaic_0001>
module attributes {stable_mosaic.version = 11 : i64} {
  func.func @_proj_kernel(%arg0: i32, %arg1: memref<32x32xf32, #tpu.memory_space<vmem>>, %arg2: memref<32x128xf32, #tpu.memory_space<vmem>>, %arg3: memref<1x128xf32, #tpu.memory_space<vmem>>, %arg4: memref<32x128xf32, #tpu.memory_space<vmem>>) attributes {dimension_semantics = [#tpu.dimension_semantics<parallel>], iteration_bounds = array<i64: 1>, scalar_prefetch = 0 : i64, scratch_operands = 0 : i64, tpu.core_type = #tpu.core_type<tc>, window_params = [{transform_indices = @transform_0, window_bounds = array<i64: 32, 32>}, {pipeline_mode = #tpu.pipeline_mode<synchronous>, transform_indices = @transform_1, window_bounds = array<i64: 32, 128>}, {pipeline_mode = #tpu.pipeline_mode<synchronous>, transform_indices = @transform_2, window_bounds = array<i64: 1, 128>}, {transform_indices = @transform_3, window_bounds = array<i64: 32, 128>}]} {
    %c0 = arith.constant 0 : index
    %c0_0 = arith.constant 0 : index
    %0 = vector.load %arg1[%c0, %c0_0] : memref<32x32xf32, #tpu.memory_space<vmem>>, vector<32x32xf32>
    %c0_1 = arith.constant 0 : index
    %c0_2 = arith.constant 0 : index
    %1 = vector.load %arg2[%c0_1, %c0_2] : memref<32x128xf32, #tpu.memory_space<vmem>>, vector<32x128xf32>
    %cst = arith.constant dense<0.000000e+00> : vector<32x128xf32>
    %2 = tpu.matmul %0, %1, %cst {dimension_numbers = #tpu.dot_dimension_numbers<[1], [0], [0], [1], [0, 0, 1, 1], [], []>} : vector<32x32xf32>, vector<32x128xf32>, vector<32x128xf32> -> vector<32x128xf32>
    %c0_3 = arith.constant 0 : index
    %c0_4 = arith.constant 0 : index
    %3 = vector.load %arg3[%c0_3, %c0_4] : memref<1x128xf32, #tpu.memory_space<vmem>>, vector<1x128xf32>
    %4 = vector.broadcast %3 : vector<1x128xf32> to vector<32x128xf32>
    %5 = arith.addf %2, %4 : vector<32x128xf32>
    %c0_5 = arith.constant 0 : index
    %c0_6 = arith.constant 0 : index
    %6 = vector.load %arg4[%c0_5, %c0_6] : memref<32x128xf32, #tpu.memory_space<vmem>>, vector<32x128xf32>
    tpu.vector_store %arg4[%c0_5, %c0_6], %5 {strides = array<i32>} : memref<32x128xf32, #tpu.memory_space<vmem>>, vector<32x128xf32>,
    return
  }
  func.func @transform_0(%arg0: i32) -> (i32, i32) {
    %c0_i32 = arith.constant 0 : i32
    %c0_i32_0 = arith.constant 0 : i32
    return %arg0, %c0_i32 : i32, i32
  }
  func.func @transform_1(%arg0: i32) -> (i32, i32) {
    %c0_i32 = arith.constant 0 : i32
    %c0_i32_0 = arith.constant 0 : i32
    %c0_i32_1 = arith.constant 0 : i32
    return %c0_i32, %c0_i32_0 : i32, i32
  }
  func.func @transform_2(%arg0: i32) -> (i32, i32) {
    %c0_i32 = arith.constant 0 : i32
    %c0_i32_0 = arith.constant 0 : i32
    %c0_i32_1 = arith.constant 0 : i32
    return %c0_i32, %c0_i32_0 : i32, i32
  }
  func.func @transform_3(%arg0: i32) -> (i32, i32) {
    %c0_i32 = arith.constant 0 : i32
    %c0_i32_0 = arith.constant 0 : i32
    return %arg0, %c0_i32 : i32, i32
  }
}

</mosaic_0001>

<bundles_post_ra>
// kernel: tpu_custom_call.1
= control target key start
LH: loop header
LB: loop body
LE: loop exit
PB: predicated region body
PF: predicated region fallthrough
CT: control target
= control target key end

     0   :  { %8 = vsyncpa [#allocation3], 0  ;;  %s371_s0 = inlined_call_operand.hbm [shape: f32[32,32], index: 0, kind: input, shape index: {}]   ;;  %s372_s1 = inlined_call_operand.hbm [shape: f32[32,128], index: 1, kind: input, shape index: {}]   ;;  %s373_s2 = inlined_call_operand.vmem [shape: f32[1,128], index: 2, kind: input, shape index: {}]   ;;  %s374_s3 = inlined_call_operand.hbm [shape: f32[32,128], index: 3, kind: output, shape index: {}]  }
   0x1   :  { %9 = vsyncpa [#allocation6], 0 }
   0x2   :  { %10 = vsyncpa [#allocation4], 0  ;;  %s294_s12 = smov [#allocation2]   ;;  %s222_s16 = scalar_lea.hbm %s371_s0, 512 }
   0x3   :  { %s16_s13 = sshll.u32 %s294_s12, 4  ;;  %p223_p0 = scmp.ne.s32.totalorder %s371_s0, %s222_s16  ;;  %s17_s13 = int_to_ptr.vmem [resolvable:$true] %s16_s13 }
   0x4   :  { %p226_p1 = scmp.lt.u32.totalorder %s222_s16, %s371_s0 }
   0x6   :  { %p228_p2 = pnand %p226_p1, %p223_p0 }
   0x8   :  { %231 = shalt.err (!%p228_p2)
}
   0x9   :  { %s232_s21 = scalar_lea.vmem %s17_s13, 512  ;;  %p237_p4 = scmp.lt.s32.totalorder %s17_s13, %s17_s13 }
   0xa   :  { %p233_p3 = scmp.ne.s32.totalorder %s17_s13, %s232_s21  ;;  %p238_p5 = scmp.lt.s32.totalorder %s232_s21, %s232_s21 }
   0xc   :  { %p239_p6 = por %p238_p5, %p237_p4 }
   0xe   :  { %p240_p7 = pnand %p239_p6, %p233_p3 }
  0x10   :  { %243 = shalt.err (!%p240_p7)
}
  0x11   :  { %s295_s22 = smov 128   ;;  %s296_s23 = smov 8  }
  0x12   :  { %22 = dma.hbm_to_vmem [thread:$0]  %s371_s0, 512, %s17_s13, [#allocation3], %s295_s22, %s295_s22, %s296_s23  }
  0x13   :  { %s297_s26 = smov [#allocation5]   ;;  %s244_s30 = scalar_lea.hbm %s372_s1, 512 }
  0x14   :  { %s28_s27 = sshll.u32 %s297_s26, 4  ;;  %p245_p8 = scmp.ne.s32.totalorder %s372_s1, %s244_s30  ;;  %s29_s27 = int_to_ptr.vmem [resolvable:$true] %s28_s27 }
  0x15   :  { %p248_p9 = scmp.lt.u32.totalorder %s244_s30, %s372_s1 }
  0x17   :  { %p250_p10 = pnand %p248_p9, %p245_p8 }
  0x19   :  { %253 = shalt.err (!%p250_p10)
}
  0x1a   :  { %s254_s8 = scalar_lea.vmem %s29_s27, 512  ;;  %p259_p12 = scmp.lt.s32.totalorder %s29_s27, %s29_s27 }
  0x1b   :  { %p255_p11 = scmp.ne.s32.totalorder %s29_s27, %s254_s8  ;;  %p260_p13 = scmp.lt.s32.totalorder %s254_s8, %s254_s8 }
  0x1d   :  { %p261_p0 = por %p260_p13, %p259_p12 }
  0x1f   :  { %p262_p1 = pnand %p261_p0, %p255_p11 }
  0x21   :  { %265 = shalt.err (!%p262_p1)
}
  0x22   :  { %34 = dma.hbm_to_vmem [thread:$0]  %s372_s1, 512, %s29_s27, [#allocation6], %s295_s22, %s295_s22, %s296_s23  }
  0x23   :  { %288 = dma.done.wait [#allocation3], 512  }
  0x24   :  { %289 = vsyncadd [#allocation3], 4294966784 }
  0x25   :  { %290 = dma.done.wait [#allocation6], 512  }
  0x26   :  { %291 = vsyncadd [#allocation6], 4294966784  ;;  %vm58_vm0 = vcmask 261120   ;;  %v47_v0 = vld [vmem:[#allocation5] sm:$0xff]  ;;  %v48_v1 = vld [vmem:[#allocation5 + $0x8] sm:$0xff]  ;;  %s298_s11 = smov [#allocation7]  }
  0x27   :  { %v49_v2 = vld [vmem:[#allocation5 + $0x10] sm:$0xff]  ;;  %v205_v3 = vpack.c.bf16 %v48_v1, %v47_v0  ;;  %v50_v4 = vld [vmem:[#allocation5 + $0x18] sm:$0xff]  ;;  %v43_v5 = vld [vmem:[#allocation2] sm:$0xff]  ;;  %s165_s12 = sshll.u32 %s298_s11, 4  ;;  %s166_s12 = int_to_ptr.vmem [resolvable:$true] %s165_s12 }
  0x28   :  { %v45_v6 = vld [vmem:[#allocation2 + $0x10] sm:$0xff]  ;;  %v209_v7 = vpack.c.bf16 %v50_v4, %v49_v2  ;;  %199 = vmatprep.mubr.msk.f32.mxu0 %vm58_vm0, %v43_v5  ;;  %v44_v8 = vld [vmem:[#allocation2 + $0x8] sm:$0xff]  ;;  %v46_v9 = vld [vmem:[#allocation2 + $0x18] sm:$0xff]  ;;  %s266_s13 = scalar_lea.vmem %s166_s12, 512  ;;  %p271_p3 = scmp.lt.s32.totalorder %s166_s12, %s166_s12 }
  0x29   :  { %202 = vmatprep.mubr.msk.f32.mxu1 %vm58_vm0, %v45_v6  ;;  %206 = vmatprep.subr.bf16.mxu0 %v205_v3  ;;  %v178_v10 = vld [vmem:[%s373_s2] ss:$0 sm:$0xff]  ;;  %p267_p2 = scmp.ne.s32.totalorder %s166_s12, %s266_s13  ;;  %p272_p4 = scmp.lt.s32.totalorder %s266_s13, %s266_s13 }
  0x2a   :  { %213 = vmatprep.subr.bf16.mxu1 %v205_v3  ;;  %208 = vmatpush3.bf16.msra.mxu0 %v205_v3 }
  0x2b   :  { %215 = vmatpush3.bf16.msra.mxu1 %v205_v3  ;;  %210 = vmatprep.subr.bf16.mxu0 %v209_v7  ;;  %p273_p5 = por %p272_p4, %p271_p3 }
  0x2c   :  { %214 = vmatprep.subr.bf16.mxu1 %v209_v7 }
  0x2d   :  { %p274_p6 = pnand %p273_p5, %p267_p2 }
  0x2e   :  { %212 = vmatpush3.bf16.msra.mxu0 %v209_v7 }
  0x2f   :  { %216 = vmatpush3.bf16.msra.mxu1 %v209_v7 }
  0x31   :  { %200 = vmatmul.mubr.msk.f32.vlgmr.msra.gmra.mrb[0].mxu0 %vm58_vm0, %v44_v8 }
  0x32   :  { %203 = vmatmul.mubr.msk.f32.vlgmr.msra.gmra.mrb[0].mxu1 %vm58_vm0, %v46_v9 }
 0x104   :  { %v201_v11 = vpop.f32.mrb[0].mxu0 }
 0x105   :  { %v204_v12 = vpop.f32.mrb[0].mxu1  ;;  %v143_v13 = vadd.f32 %v201_v11, %v178_v10  ;;  %v137_v15 = vpop.f32.mrb[1].mxu0 }
 0x106   :  { %v153_v14 = vadd.f32 %v204_v12, %v178_v10  ;;  %v147_v16 = vpop.f32.mrb[1].mxu1  ;;  %v138_v17 = vadd.f32 %v178_v10, %v137_v15 }
 0x107   :  { %v148_v18 = vadd.f32 %v178_v10, %v147_v16  ;;  %157 = vst [vmem:[#allocation7 + $0x8] sm:$0xff] %v143_v13 }
 0x108   :  { %159 = vst [vmem:[#allocation7 + $0x18] sm:$0xff] %v153_v14  ;;  %156 = vst [vmem:[#allocation7] sm:$0xff] %v138_v17 }
 0x109   :  { %158 = vst [vmem:[#allocation7 + $0x10] sm:$0xff] %v148_v18 }
 0x10a   :  { %277 = shalt.err (!%p274_p6)
}
 0x10b   :  { %s278_s15 = scalar_lea.hbm %s374_s3, 512 }
 0x10c   :  { %p279_p7 = scmp.ne.s32.totalorder %s374_s3, %s278_s15  ;;  %p282_p8 = scmp.lt.u32.totalorder %s278_s15, %s374_s3 }
 0x10e   :  { %p284_p9 = pnand %p282_p8, %p279_p7 }
 0x110   :  { %287 = shalt.err (!%p284_p9)
}
 0x111   :  { %171 = dma.vmem_to_hbm [thread:$0]  %s166_s12, 512, %s374_s3, [#allocation4], %s295_s22, %s295_s22, %s296_s23  }
 0x112   :  { %292 = dma.done.wait [#allocation4], 512  }
 0x113   :  { %293 = vsyncadd [#allocation4], 4294966784 }
 0x114   :  { %175 = vsyncpa [#allocation3], 1 }
 0x115   :  { %176 = vsyncpa [#allocation6], 1 }
 0x116   :  { %177 = vsyncpa [#allocation4], 1 }

</bundles_post_ra>
